<compile_context>
chip_gen: v6e
topology: v6e:2x2x1
jax: 0.10.0
libtpu: 0.0.40
codegen_flags: <defaults>
</compile_context>

<pallas_src>
import functools

import jax
import jax.numpy as jnp
from jax.experimental import pallas as pl
from jax.experimental.pallas import tpu as pltpu

_EPS = 1e-5


# ----------------------------------------------------------------------------
# helpers (wrapper side)
# ----------------------------------------------------------------------------
def _row_band(nh: int, cap: int = 256) -> int:
    """Largest multiple-of-8 divisor of nh (<= cap, and <= nh//2 when possible
    so the grid pipelines over >1 step). Falls back to nh (always legal)."""
    target = min(cap, nh)
    if nh > 8:
        target = min(target, max(8, nh // 2))
    for tb in range(target, 7, -1):
        if nh % tb == 0 and tb % 8 == 0:
            return tb
    return nh


def _banded_conv3_weight(w3_hwio, W):
    """(3,3,Cin,Cout) -> (3*(W+2)*Cin, W*Cout) banded matrix so that
    y_dense = A @ Wt, where row h of A is the concat of padded input rows
    h, h+1, h+2 (each laid out as (W+2)*Cin lanes)."""
    _, _, Cin, Cout = w3_hwio.shape
    blocks = []
    for dy in range(3):
        blk = jnp.zeros(((W + 2) * Cin, W * Cout), jnp.float32)
        for dx in range(3):
            sel = jnp.eye(W + 2, W, k=-dx, dtype=jnp.float32)  # wp = w + dx
            blk = blk + jnp.kron(sel, w3_hwio[dy, dx].astype(jnp.float32))
        blocks.append(blk)
    return jnp.concatenate(blocks, axis=0)


def _bn_scale_shift(partial_stats, gamma, beta, W, Cout, count):
    """Fold per-tile [sum; sumsq] partials (tiles, 2, W*Cout) into per-channel
    BN scale/shift, tiled back to the lane-dense (1, W*Cout) layout."""
    tot = jnp.sum(partial_stats, axis=0)             # (2, W*Cout)
    tot = tot.reshape(2, W, Cout).sum(axis=1)        # (2, Cout)
    mean = tot[0] / count
    var = tot[1] / count - mean * mean               # biased variance (train)
    scale = gamma * jax.lax.rsqrt(var + _EPS)
    shift = beta - mean * scale
    return (jnp.tile(scale, W).reshape(1, W * Cout),
            jnp.tile(shift, W).reshape(1, W * Cout))


# ----------------------------------------------------------------------------
# kernels
# ----------------------------------------------------------------------------
def _conv3_kernel(x_ref, wt_ref, y_ref, st_ref, xp_ref, *, H, W, Cin):
    # x_ref : (1, H, W*Cin)          one sample, lane-dense rows
    # wt_ref: (3*(W+2)*Cin, W*Cout)  banded 3x3 conv weight
    # y_ref : (1, H, W*Cout)         raw conv output (lane-dense)
    # st_ref: (1, 2, W*Cout)         per-tile [sum; sum of squares]
    # xp_ref: VMEM scratch (H+2, (W+2)*Cin); zero border == conv padding
    xp_ref[...] = jnp.zeros(xp_ref.shape, jnp.float32)
    xp_ref[1:H + 1, Cin:(W + 1) * Cin] = x_ref[0].astype(jnp.float32)
    # Row h gathers padded rows h, h+1, h+2; horizontal taps are encoded in
    # the banded weight, so the whole 3x3 conv is a single MXU matmul.
    a = jnp.concatenate(
        [xp_ref[0:H, :], xp_ref[1:H + 1, :], xp_ref[2:H + 2, :]], axis=1)
    y = jnp.dot(a, wt_ref[...], preferred_element_type=jnp.float32)
    s = jnp.sum(y, axis=0, keepdims=True)
    ss = jnp.sum(y * y, axis=0, keepdims=True)
    st_ref[0] = jnp.concatenate([s, ss], axis=0)
    y_ref[0] = y


def _bn_relu_conv1_kernel(y_ref, sc_ref, sh_ref, w_ref, z_ref, st_ref):
    # y_ref: (TB, W*Cout); sc/sh: (1, W*Cout); w_ref: block-diag (W*Cout)^2
    a = jnp.maximum(y_ref[...] * sc_ref[...] + sh_ref[...], 0.0)
    z = jnp.dot(a, w_ref[...], preferred_element_type=jnp.float32)
    s = jnp.sum(z, axis=0, keepdims=True)
    ss = jnp.sum(z * z, axis=0, keepdims=True)
    st_ref[0] = jnp.concatenate([s, ss], axis=0)
    z_ref[...] = z


def _bn_relu_kernel(z_ref, sc_ref, sh_ref, o_ref):
    o_ref[...] = jnp.maximum(z_ref[...] * sc_ref[...] + sh_ref[...], 0.0)


# ----------------------------------------------------------------------------
# forward
# ----------------------------------------------------------------------------
@jax.jit
def conv_block_forward(x_nchw, w3_hwio, w1, gamma1, beta1, gamma2, beta2):
    """x_nchw: (N, Cin, H, W) -> (N, Cout, H, W)."""
    N, Cin, H, W = x_nchw.shape
    Cout = w3_hwio.shape[-1]
    WC = W * Cout
    L = (W + 2) * Cin
    parallel = pltpu.CompilerParams(dimension_semantics=("parallel",))

    # NCHW -> NHWC -> (N, H, W*Cin). One transpose; the reshape is free.
    x_rows = jnp.transpose(x_nchw, (0, 2, 3, 1)).reshape(N, H, W * Cin)

    # Structured weights (tiny, built once outside the kernels).
    wt3 = _banded_conv3_weight(w3_hwio, W)                          # (3L, WC)
    w1bd = jnp.kron(jnp.eye(W, dtype=jnp.float32),
                    w1.astype(jnp.float32))                         # (WC, WC)

    # ---- pass A: 3x3 conv + BN1 partial stats (one sample per grid step) ---
    y1, st1 = pl.pallas_call(
        functools.partial(_conv3_kernel, H=H, W=W, Cin=Cin),
        grid=(N,),
        in_specs=[
            pl.BlockSpec((1, H, W * Cin), lambda n: (n, 0, 0)),
            pl.BlockSpec((3 * L, WC), lambda n: (0, 0)),
        ],
        out_specs=[
            pl.BlockSpec((1, H, WC), lambda n: (n, 0, 0)),
            pl.BlockSpec((1, 2, WC), lambda n: (n, 0, 0)),
        ],
        out_shape=[
            jax.ShapeDtypeStruct((N, H, WC), jnp.float32),
            jax.ShapeDtypeStruct((N, 2, WC), jnp.float32),
        ],
        scratch_shapes=[pltpu.VMEM((H + 2, L), jnp.float32)],
        compiler_params=parallel,
    )(x_rows, wt3)

    sc1, sh1 = _bn_scale_shift(st1, gamma1, beta1, W, Cout, N * H * W)

    # ---- pass B: BN1 + ReLU + 1x1 conv + BN2 partial stats (row bands) -----
    NH = N * H
    TB = _row_band(NH)
    nb = NH // TB
    y1_rows = y1.reshape(NH, WC)
    z, st2 = pl.pallas_call(
        _bn_relu_conv1_kernel,
        grid=(nb,),
        in_specs=[
            pl.BlockSpec((TB, WC), lambda i: (i, 0)),
            pl.BlockSpec((1, WC), lambda i: (0, 0)),
            pl.BlockSpec((1, WC), lambda i: (0, 0)),
            pl.BlockSpec((WC, WC), lambda i: (0, 0)),
        ],
        out_specs=[
            pl.BlockSpec((TB, WC), lambda i: (i, 0)),
            pl.BlockSpec((1, 2, WC), lambda i: (i, 0, 0)),
        ],
        out_shape=[
            jax.ShapeDtypeStruct((NH, WC), jnp.float32),
            jax.ShapeDtypeStruct((nb, 2, WC), jnp.float32),
        ],
        compiler_params=parallel,
    )(y1_rows, sc1, sh1, w1bd)

    sc2, sh2 = _bn_scale_shift(st2, gamma2, beta2, W, Cout, N * H * W)

    # ---- pass C: BN2 + ReLU, pure lane-dense pointwise ----------------------
    out_rows = pl.pallas_call(
        _bn_relu_kernel,
        grid=(nb,),
        in_specs=[
            pl.BlockSpec((TB, WC), lambda i: (i, 0)),
            pl.BlockSpec((1, WC), lambda i: (0, 0)),
            pl.BlockSpec((1, WC), lambda i: (0, 0)),
        ],
        out_specs=pl.BlockSpec((TB, WC), lambda i: (i, 0)),
        out_shape=jax.ShapeDtypeStruct((NH, WC), jnp.float32),
        compiler_params=parallel,
    )(z, sc2, sh2)

    out = out_rows.reshape(N, H, W, Cout)
    return jnp.transpose(out, (0, 3, 1, 2))  # back to NCHW


# ----------------------------------------------------------------------------
# pure-JAX reference (independent of the kernel's math path)
# ----------------------------------------------------------------------------
def reference_forward(x_nchw, w3_hwio, w1, g1, b1, g2, b2):
    x = jnp.transpose(x_nchw, (0, 2, 3, 1))
    y = jax.lax.conv_general_dilated(
        x, w3_hwio, window_strides=(1, 1), padding="SAME",
        dimension_numbers=("NHWC", "HWIO", "NHWC"))

    def bn(t, g, b):
        m = jnp.mean(t, axis=(0, 1, 2), keepdims=True)
        v = jnp.mean((t - m) ** 2, axis=(0, 1, 2), keepdims=True)
        return (t - m) * jax.lax.rsqrt(v + _EPS) * g.reshape(1, 1, 1, -1) \
               + b.reshape(1, 1, 1, -1)

    y = jnp.maximum(bn(y, g1, b1), 0.0)
    z = jnp.einsum("nhwc,cd->nhwd", y, w1)
    z = jnp.maximum(bn(z, g2, b2), 0.0)
    return jnp.transpose(z, (0, 3, 1, 2))


if __name__ == "__main__":
    N, Cin, Cout, H, W = 2, 4, 8, 16, 16

    key = jax.random.PRNGKey(0)
    kx, kw3, kw1, kg1, kb1, kg2, kb2 = jax.random.split(key, 7)

    x = jax.random.normal(kx, (N, Cin, H, W), jnp.float32)
    w3 = 0.1 * jax.random.normal(kw3, (3, 3, Cin, Cout), jnp.float32)  # HWIO
    w1 = 0.1 * jax.random.normal(kw1, (Cout, Cout), jnp.float32)       # in,out
    g1 = 1.0 + 0.1 * jax.random.normal(kg1, (Cout,), jnp.float32)
    b1 = 0.1 * jax.random.normal(kb1, (Cout,), jnp.float32)
    g2 = 1.0 + 0.1 * jax.random.normal(kg2, (Cout,), jnp.float32)
    b2 = 0.1 * jax.random.normal(kb2, (Cout,), jnp.float32)

    out = conv_block_forward(x, w3, w1, g1, b1, g2, b2)
    out = jax.block_until_ready(out)

    ref = reference_forward(x, w3, w1, g1, b1, g2, b2)
    assert out.shape == (N, Cout, H, W)
    assert jnp.allclose(out, ref, atol=1e-4, rtol=1e-4), "mismatch vs reference"

    print("KERNEL_OK")
</pallas_src>

<mosaic_0001>
module attributes {stable_mosaic.version = 11 : i64} {
  func.func @_conv3_kernel(%arg0: i32, %arg1: memref<1x16x64xf32, #tpu.memory_space<vmem>>, %arg2: memref<216x128xf32, #tpu.memory_space<vmem>>, %arg3: memref<1x16x128xf32, #tpu.memory_space<vmem>>, %arg4: memref<1x2x128xf32, #tpu.memory_space<vmem>>, %arg5: memref<18x72xf32, #tpu.memory_space<vmem>>) attributes {dimension_semantics = [#tpu.dimension_semantics<parallel>], iteration_bounds = array<i64: 2>, scalar_prefetch = 0 : i64, scratch_operands = 1 : i64, tpu.core_type = #tpu.core_type<tc>, window_params = [{transform_indices = @transform_0, window_bounds = array<i64: 1, 16, 64>}, {pipeline_mode = #tpu.pipeline_mode<synchronous>, transform_indices = @transform_1, window_bounds = array<i64: 216, 128>}, {transform_indices = @transform_2, window_bounds = array<i64: 1, 16, 128>}, {transform_indices = @transform_3, window_bounds = array<i64: 1, 2, 128>}]} {
    %cst = arith.constant 0.000000e+00 : f32
    %0 = vector.broadcast %cst : f32 to vector<18x72xf32>
    %c0 = arith.constant 0 : index
    %c0_0 = arith.constant 0 : index
    %1 = vector.load %arg5[%c0, %c0_0] : memref<18x72xf32, #tpu.memory_space<vmem>>, vector<18x72xf32>
    tpu.vector_store %arg5[%c0, %c0_0], %0 {strides = array<i32>} : memref<18x72xf32, #tpu.memory_space<vmem>>, vector<18x72xf32>,
    %c0_1 = arith.constant 0 : index
    %c0_2 = arith.constant 0 : index
    %c0_3 = arith.constant 0 : index
    %2 = vector.load %arg1[%c0_1, %c0_2, %c0_3] : memref<1x16x64xf32, #tpu.memory_space<vmem>>, vector<1x16x64xf32>
    %3 = vector.shape_cast %2 : vector<1x16x64xf32> to vector<16x64xf32>
    %c1 = arith.constant 1 : index
    %c4 = arith.constant 4 : index
    %4 = vector.load %arg5[%c1, %c4] : memref<18x72xf32, #tpu.memory_space<vmem>>, vector<16x64xf32>
    tpu.vector_store %arg5[%c1, %c4], %3 {strides = array<i32>} : memref<18x72xf32, #tpu.memory_space<vmem>>, vector<16x64xf32>,
    %c0_4 = arith.constant 0 : index
    %c0_5 = arith.constant 0 : index
    %5 = vector.load %arg5[%c0_4, %c0_5] : memref<18x72xf32, #tpu.memory_space<vmem>>, vector<16x72xf32>
    %c1_6 = arith.constant 1 : index
    %c0_7 = arith.constant 0 : index
    %6 = vector.load %arg5[%c1_6, %c0_7] : memref<18x72xf32, #tpu.memory_space<vmem>>, vector<16x72xf32>
    %c2 = arith.constant 2 : index
    %c0_8 = arith.constant 0 : index
    %7 = vector.load %arg5[%c2, %c0_8] : memref<18x72xf32, #tpu.memory_space<vmem>>, vector<16x72xf32>
    %8 = tpu.concatenate %5, %6, %7 in 1 : vector<16x72xf32>, vector<16x72xf32>, vector<16x72xf32> -> vector<16x216xf32>
    %c0_9 = arith.constant 0 : index
    %c0_10 = arith.constant 0 : index
    %9 = vector.load %arg2[%c0_9, %c0_10] : memref<216x128xf32, #tpu.memory_space<vmem>>, vector<216x128xf32>
    %cst_11 = arith.constant dense<0.000000e+00> : vector<16x128xf32>
    %10 = tpu.matmul %8, %9, %cst_11 {dimension_numbers = #tpu.dot_dimension_numbers<[1], [0], [0], [1], [0, 0, 1, 1], [], []>} : vector<16x216xf32>, vector<216x128xf32>, vector<16x128xf32> -> vector<16x128xf32>
    %cst_12 = arith.constant dense<0.000000e+00> : vector<128xf32>
    %11 = vector.multi_reduction <add>, %10, %cst_12 [0] : vector<16x128xf32> to vector<128xf32>
    %12 = vector.shape_cast %11 : vector<128xf32> to vector<1x128xf32>
    %13 = arith.mulf %10, %10 : vector<16x128xf32>
    %cst_13 = arith.constant dense<0.000000e+00> : vector<128xf32>
    %14 = vector.multi_reduction <add>, %13, %cst_13 [0] : vector<16x128xf32> to vector<128xf32>
    %15 = vector.shape_cast %14 : vector<128xf32> to vector<1x128xf32>
    %16 = tpu.concatenate %12, %15 in 0 : vector<1x128xf32>, vector<1x128xf32> -> vector<2x128xf32>
    %c0_14 = arith.constant 0 : index
    %c0_15 = arith.constant 0 : index
    %c0_16 = arith.constant 0 : index
    %17 = vector.load %arg4[%c0_14, %c0_15, %c0_16] : memref<1x2x128xf32, #tpu.memory_space<vmem>>, vector<1x2x128xf32>
    %18 = vector.shape_cast %17 : vector<1x2x128xf32> to vector<2x128xf32>
    %19 = vector.shape_cast %16 : vector<2x128xf32> to vector<1x2x128xf32>
    tpu.vector_store %arg4[%c0_14, %c0_15, %c0_16], %19 {strides = array<i32>} : memref<1x2x128xf32, #tpu.memory_space<vmem>>, vector<1x2x128xf32>,
    %c0_17 = arith.constant 0 : index
    %c0_18 = arith.constant 0 : index
    %c0_19 = arith.constant 0 : index
    %20 = vector.load %arg3[%c0_17, %c0_18, %c0_19] : memref<1x16x128xf32, #tpu.memory_space<vmem>>, vector<1x16x128xf32>
    %21 = vector.shape_cast %20 : vector<1x16x128xf32> to vector<16x128xf32>
    %22 = vector.shape_cast %10 : vector<16x128xf32> to vector<1x16x128xf32>
    tpu.vector_store %arg3[%c0_17, %c0_18, %c0_19], %22 {strides = array<i32>} : memref<1x16x128xf32, #tpu.memory_space<vmem>>, vector<1x16x128xf32>,
    return
  }
  func.func @transform_0(%arg0: i32) -> (i32, i32, i32) {
    %c0_i32 = arith.constant 0 : i32
    %c0_i32_0 = arith.constant 0 : i32
    %c0_i32_1 = arith.constant 0 : i32
    return %arg0, %c0_i32, %c0_i32_0 : i32, i32, i32
  }
  func.func @transform_1(%arg0: i32) -> (i32, i32) {
    %c0_i32 = arith.constant 0 : i32
    %c0_i32_0 = arith.constant 0 : i32
    %c0_i32_1 = arith.constant 0 : i32
    return %c0_i32, %c0_i32_0 : i32, i32
  }
  func.func @transform_2(%arg0: i32) -> (i32, i32, i32) {
    %c0_i32 = arith.constant 0 : i32
    %c0_i32_0 = arith.constant 0 : i32
    %c0_i32_1 = arith.constant 0 : i32
    return %arg0, %c0_i32, %c0_i32_0 : i32, i32, i32
  }
  func.func @transform_3(%arg0: i32) -> (i32, i32, i32) {
    %c0_i32 = arith.constant 0 : i32
    %c0_i32_0 = arith.constant 0 : i32
    %c0_i32_1 = arith.constant 0 : i32
    return %arg0, %c0_i32, %c0_i32_0 : i32, i32, i32
  }
}

module attributes {stable_mosaic.version = 11 : i64} {
  func.func @_bn_relu_kernel(%arg0: i32, %arg1: memref<16x128xf32, #tpu.memory_space<vmem>>, %arg2: memref<1x128xf32, #tpu.memory_space<vmem>>, %arg3: memref<1x128xf32, #tpu.memory_space<vmem>>, %arg4: memref<16x128xf32, #tpu.memory_space<vmem>>) attributes {dimension_semantics = [#tpu.dimension_semantics<parallel>], iteration_bounds = array<i64: 2>, scalar_prefetch = 0 : i64, scratch_operands = 0 : i64, tpu.core_type = #tpu.core_type<tc>, window_params = [{transform_indices = @transform_0, window_bounds = array<i64: 16, 128>}, {pipeline_mode = #tpu.pipeline_mode<synchronous>, transform_indices = @transform_1, window_bounds = array<i64: 1, 128>}, {pipeline_mode = #tpu.pipeline_mode<synchronous>, transform_indices = @transform_2, window_bounds = array<i64: 1, 128>}, {transform_indices = @transform_3, window_bounds = array<i64: 16, 128>}]} {
    %c0 = arith.constant 0 : index
    %c0_0 = arith.constant 0 : index
    %0 = vector.load %arg1[%c0, %c0_0] : memref<16x128xf32, #tpu.memory_space<vmem>>, vector<16x128xf32>
    %c0_1 = arith.constant 0 : index
    %c0_2 = arith.constant 0 : index
    %1 = vector.load %arg2[%c0_1, %c0_2] : memref<1x128xf32, #tpu.memory_space<vmem>>, vector<1x128xf32>
    %2 = vector.broadcast %1 : vector<1x128xf32> to vector<16x128xf32>
    %3 = arith.mulf %0, %2 : vector<16x128xf32>
    %c0_3 = arith.constant 0 : index
    %c0_4 = arith.constant 0 : index
    %4 = vector.load %arg3[%c0_3, %c0_4] : memref<1x128xf32, #tpu.memory_space<vmem>>, vector<1x128xf32>
    %5 = vector.broadcast %4 : vector<1x128xf32> to vector<16x128xf32>
    %6 = arith.addf %3, %5 : vector<16x128xf32>
    %cst = arith.constant 0.000000e+00 : f32
    %7 = vector.broadcast %cst : f32 to vector<16x128xf32>
    %8 = arith.maximumf %6, %7 : vector<16x128xf32>
    %c0_5 = arith.constant 0 : index
    %c0_6 = arith.constant 0 : index
    %9 = vector.load %arg4[%c0_5, %c0_6] : memref<16x128xf32, #tpu.memory_space<vmem>>, vector<16x128xf32>
    tpu.vector_store %arg4[%c0_5, %c0_6], %8 {strides = array<i32>} : memref<16x128xf32, #tpu.memory_space<vmem>>, vector<16x128xf32>,
    return
  }
  func.func @transform_0(%arg0: i32) -> (i32, i32) {
    %c0_i32 = arith.constant 0 : i32
    %c0_i32_0 = arith.constant 0 : i32
    return %arg0, %c0_i32 : i32, i32
  }
  func.func @transform_1(%arg0: i32) -> (i32, i32) {
    %c0_i32 = arith.constant 0 : i32
    %c0_i32_0 = arith.constant 0 : i32
    %c0_i32_1 = arith.constant 0 : i32
    return %c0_i32, %c0_i32_0 : i32, i32
  }
  func.func @transform_2(%arg0: i32) -> (i32, i32) {
    %c0_i32 = arith.constant 0 : i32
    %c0_i32_0 = arith.constant 0 : i32
    %c0_i32_1 = arith.constant 0 : i32
    return %c0_i32, %c0_i32_0 : i32, i32
  }
  func.func @transform_3(%arg0: i32) -> (i32, i32) {
    %c0_i32 = arith.constant 0 : i32
    %c0_i32_0 = arith.constant 0 : i32
    return %arg0, %c0_i32 : i32, i32
  }
}

module attributes {stable_mosaic.version = 11 : i64} {
  func.func @_bn_relu_conv1_kernel(%arg0: i32, %arg1: memref<16x128xf32, #tpu.memory_space<vmem>>, %arg2: memref<1x128xf32, #tpu.memory_space<vmem>>, %arg3: memref<1x128xf32, #tpu.memory_space<vmem>>, %arg4: memref<128x128xf32, #tpu.memory_space<vmem>>, %arg5: memref<16x128xf32, #tpu.memory_space<vmem>>, %arg6: memref<1x2x128xf32, #tpu.memory_space<vmem>>) attributes {dimension_semantics = [#tpu.dimension_semantics<parallel>], iteration_bounds = array<i64: 2>, scalar_prefetch = 0 : i64, scratch_operands = 0 : i64, tpu.core_type = #tpu.core_type<tc>, window_params = [{transform_indices = @transform_0, window_bounds = array<i64: 16, 128>}, {pipeline_mode = #tpu.pipeline_mode<synchronous>, transform_indices = @transform_1, window_bounds = array<i64: 1, 128>}, {pipeline_mode = #tpu.pipeline_mode<synchronous>, transform_indices = @transform_2, window_bounds = array<i64: 1, 128>}, {pipeline_mode = #tpu.pipeline_mode<synchronous>, transform_indices = @transform_3, window_bounds = array<i64: 128, 128>}, {transform_indices = @transform_4, window_bounds = array<i64: 16, 128>}, {transform_indices = @transform_5, window_bounds = array<i64: 1, 2, 128>}]} {
    %c0 = arith.constant 0 : index
    %c0_0 = arith.constant 0 : index
    %0 = vector.load %arg1[%c0, %c0_0] : memref<16x128xf32, #tpu.memory_space<vmem>>, vector<16x128xf32>
    %c0_1 = arith.constant 0 : index
    %c0_2 = arith.constant 0 : index
    %1 = vector.load %arg2[%c0_1, %c0_2] : memref<1x128xf32, #tpu.memory_space<vmem>>, vector<1x128xf32>
    %2 = vector.broadcast %1 : vector<1x128xf32> to vector<16x128xf32>
    %3 = arith.mulf %0, %2 : vector<16x128xf32>
    %c0_3 = arith.constant 0 : index
    %c0_4 = arith.constant 0 : index
    %4 = vector.load %arg3[%c0_3, %c0_4] : memref<1x128xf32, #tpu.memory_space<vmem>>, vector<1x128xf32>
    %5 = vector.broadcast %4 : vector<1x128xf32> to vector<16x128xf32>
    %6 = arith.addf %3, %5 : vector<16x128xf32>
    %cst = arith.constant 0.000000e+00 : f32
    %7 = vector.broadcast %cst : f32 to vector<16x128xf32>
    %8 = arith.maximumf %6, %7 : vector<16x128xf32>
    %c0_5 = arith.constant 0 : index
    %c0_6 = arith.constant 0 : index
    %9 = vector.load %arg4[%c0_5, %c0_6] : memref<128x128xf32, #tpu.memory_space<vmem>>, vector<128x128xf32>
    %cst_7 = arith.constant dense<0.000000e+00> : vector<16x128xf32>
    %10 = tpu.matmul %8, %9, %cst_7 {dimension_numbers = #tpu.dot_dimension_numbers<[1], [0], [0], [1], [0, 0, 1, 1], [], []>} : vector<16x128xf32>, vector<128x128xf32>, vector<16x128xf32> -> vector<16x128xf32>
    %cst_8 = arith.constant dense<0.000000e+00> : vector<128xf32>
    %11 = vector.multi_reduction <add>, %10, %cst_8 [0] : vector<16x128xf32> to vector<128xf32>
    %12 = vector.shape_cast %11 : vector<128xf32> to vector<1x128xf32>
    %13 = arith.mulf %10, %10 : vector<16x128xf32>
    %cst_9 = arith.constant dense<0.000000e+00> : vector<128xf32>
    %14 = vector.multi_reduction <add>, %13, %cst_9 [0] : vector<16x128xf32> to vector<128xf32>
    %15 = vector.shape_cast %14 : vector<128xf32> to vector<1x128xf32>
    %16 = tpu.concatenate %12, %15 in 0 : vector<1x128xf32>, vector<1x128xf32> -> vector<2x128xf32>
    %c0_10 = arith.constant 0 : index
    %c0_11 = arith.constant 0 : index
    %c0_12 = arith.constant 0 : index
    %17 = vector.load %arg6[%c0_10, %c0_11, %c0_12] : memref<1x2x128xf32, #tpu.memory_space<vmem>>, vector<1x2x128xf32>
    %18 = vector.shape_cast %17 : vector<1x2x128xf32> to vector<2x128xf32>
    %19 = vector.shape_cast %16 : vector<2x128xf32> to vector<1x2x128xf32>
    tpu.vector_store %arg6[%c0_10, %c0_11, %c0_12], %19 {strides = array<i32>} : memref<1x2x128xf32, #tpu.memory_space<vmem>>, vector<1x2x128xf32>,
    %c0_13 = arith.constant 0 : index
    %c0_14 = arith.constant 0 : index
    %20 = vector.load %arg5[%c0_13, %c0_14] : memref<16x128xf32, #tpu.memory_space<vmem>>, vector<16x128xf32>
    tpu.vector_store %arg5[%c0_13, %c0_14], %10 {strides = array<i32>} : memref<16x128xf32, #tpu.memory_space<vmem>>, vector<16x128xf32>,
    return
  }
  func.func @transform_0(%arg0: i32) -> (i32, i32) {
    %c0_i32 = arith.constant 0 : i32
    %c0_i32_0 = arith.constant 0 : i32
    return %arg0, %c0_i32 : i32, i32
  }
  func.func @transform_1(%arg0: i32) -> (i32, i32) {
    %c0_i32 = arith.constant 0 : i32
    %c0_i32_0 = arith.constant 0 : i32
    %c0_i32_1 = arith.constant 0 : i32
    return %c0_i32, %c0_i32_0 : i32, i32
  }
  func.func @transform_2(%arg0: i32) -> (i32, i32) {
    %c0_i32 = arith.constant 0 : i32
    %c0_i32_0 = arith.constant 0 : i32
    %c0_i32_1 = arith.constant 0 : i32
    return %c0_i32, %c0_i32_0 : i32, i32
  }
  func.func @transform_3(%arg0: i32) -> (i32, i32) {
    %c0_i32 = arith.constant 0 : i32
    %c0_i32_0 = arith.constant 0 : i32
    %c0_i32_1 = arith.constant 0 : i32
    return %c0_i32, %c0_i32_0 : i32, i32
  }
  func.func @transform_4(%arg0: i32) -> (i32, i32) {
    %c0_i32 = arith.constant 0 : i32
    %c0_i32_0 = arith.constant 0 : i32
    return %arg0, %c0_i32 : i32, i32
  }
  func.func @transform_5(%arg0: i32) -> (i32, i32, i32) {
    %c0_i32 = arith.constant 0 : i32
    %c0_i32_0 = arith.constant 0 : i32
    %c0_i32_1 = arith.constant 0 : i32
    return %arg0, %c0_i32, %c0_i32_0 : i32, i32, i32
  }
}

</mosaic_0001>

<bundles_post_ra>
// kernel: tile.23
= control target key start
LH: loop header
LB: loop body
LE: loop exit
PB: predicated region body
PF: predicated region fallthrough
CT: control target
= control target key end

     0   :  { %s28_s0 = inlined_call_operand.vmem [shape: f32[8], index: 0, kind: input, shape index: {}]   ;;  %s29_s1 = inlined_call_operand.vmem [shape: f32[16,8], index: 1, kind: output, shape index: {}]  }
   0x1   :  { %v4_v0 = vld [vmem:[%s28_s0] ss:$0 sm:$0xff] }
   0x2   :  { %5 = vst [vmem:[%s29_s1] sm:$0xff] %v4_v0  ;;  %8 = vst [vmem:[%s29_s1 + $0x8] sm:$0xff] %v4_v0 }

// kernel: tile.24
= control target key start
LH: loop header
LB: loop body
LE: loop exit
PB: predicated region body
PF: predicated region fallthrough
CT: control target
= control target key end

     0   :  { %s133_s10 = smov 120   ;;  %s134_s11 = smov 104   ;;  %vm3_vm0 = vcmask 64512   ;;  %vm9_vm1 = vcmask 1048512   ;;  %vm15_vm2 = vcmask 982912   ;;  %vm21_vm3 = vcmask 917312   ;;  %s209_s0 = inlined_call_operand.vmem [shape: f32[16,8], index: 0, kind: input, shape index: {}]   ;;  %s210_s1 = inlined_call_operand.vmem [shape: f32[1,128], index: 1, kind: output, shape index: {}]  }
   0x1   :  { %v103_v0 = vld [vmem:[%s209_s0 + $0xf] sm:$0x1]   ;;  %v105_v1 = vld [vmem:[%s209_s0 + $0xd] sm:$0x1]   ;;  %v104_v2 = vld [vmem:[%s209_s0 + $0xe] sm:$0x1]  }
   0x2   :  { %7 = vrot.lane.b32.xlu0 %v103_v0, %s133_s10  ;;  %19 = vrot.lane.b32.xlu1 %v105_v1, %s134_s11  ;;  %v106_v3 = vld [vmem:[%s209_s0 + $0xc] sm:$0x1]   ;;  %s135_s16 = smov 112   ;;  %s136_s17 = smov 96   ;;  %v107_v4 = vld [vmem:[%s209_s0 + $0xb] sm:$0x1]  }
   0x3   :  { %v108_v5 = vld [vmem:[%s209_s0 + $0xa] sm:$0x1]   ;;  %v2_v6 = vld [vmem:[%s209_s0] sm:$0x1]   ;;  %s137_s24 = smov 88   ;;  %s138_s25 = smov 80  }
   0x4   :  { %4 = vst.msk [vmem:[#allocation0] sm:$0x1] %vm3_vm0, %v2_v6   ;;  %v109_v7 = vld [vmem:[%s209_s0 + $0x9] sm:$0x1]   ;;  %v110_v8 = vld [vmem:[%s209_s0 + $0x8] sm:$0x1]  }
   0x5   :  { %s139_s30 = smov 72   ;;  %s140_s2 = smov 64   ;;  %v111_v9 = vld [vmem:[%s209_s0 + $0x7] sm:$0x1]   ;;  %v112_v10 = vld [vmem:[%s209_s0 + $0x6] sm:$0x1]  }
   0x6   :  { %13 = vrot.lane.b32.xlu0 %v104_v2, %s135_s16  ;;  %25 = vrot.lane.b32.xlu1 %v106_v3, %s136_s17  ;;  %s141_s7 = smov 56   ;;  %s142_s8 = smov 48   ;;  %v113_v11 = vld [vmem:[%s209_s0 + $0x5] sm:$0x1]   ;;  %v114_v12 = vld [vmem:[%s209_s0 + $0x4] sm:$0x1]  }
   0x7   :  { %s143_s13 = smov 40   ;;  %s144_s14 = smov 32   ;;  %v115_v13 = vld [vmem:[%s209_s0 + $0x3] sm:$0x1]   ;;  %v116_v14 = vld [vmem:[%s209_s0 + $0x2] sm:$0x1]  }
   0x8   :  { %s145_s19 = smov 24   ;;  %s146_s20 = smov 16   ;;  %v117_v15 = vld [vmem:[%s209_s0 + $0x1] sm:$0x1]   ;;  %vm27_vm4 = vcmask 851712   ;;  %vm33_vm5 = vcmask 786112  }
   0x9   :  { %s147_s0 = smov 8   ;;  %vm39_vm6 = vcmask 720512   ;;  %vm45_vm7 = vcmask 654912   ;;  %vm51_vm8 = vcmask 589312   ;;  %vm57_vm9 = vcmask 523712  }
   0xa   :  { %31 = vrot.lane.b32.xlu0 %v107_v4, %s137_s24  ;;  %37 = vrot.lane.b32.xlu1 %v108_v5, %s138_s25  ;;  %vm63_vm10 = vcmask 458112   ;;  %vm69_vm11 = vcmask 392512   ;;  %vm75_vm12 = vcmask 326912   ;;  %vm81_vm13 = vcmask 261312  }
   0xb   :  { %vm87_vm14 = vcmask 195712   ;;  %vm93_vm15 = vcmask 130112  }
   0xe   :  { %43 = vrot.lane.b32.xlu0 %v109_v7, %s139_s30  ;;  %49 = vrot.lane.b32.xlu1 %v110_v8, %s140_s2 }
  0x12   :  { %55 = vrot.lane.b32.xlu0 %v111_v9, %s141_s7  ;;  %61 = vrot.lane.b32.xlu1 %v112_v10, %s142_s8 }
  0x16   :  { %67 = vrot.lane.b32.xlu0 %v113_v11, %s143_s13  ;;  %73 = vrot.lane.b32.xlu1 %v114_v12, %s144_s14 }
  0x1a   :  { %79 = vrot.lane.b32.xlu0 %v115_v13, %s145_s19  ;;  %85 = vrot.lane.b32.xlu1 %v116_v14, %s146_s20 }
  0x1e   :  { %91 = vrot.lane.b32.xlu0 %v117_v15, %s147_s0 }
  0x74   :  { %v8_v16 = vpop.permute.xlu0 %7   ;;  %v20_v17 = vpop.permute.xlu1 %19  }
  0x75   :  { %10 = vst.msk [vmem:[#allocation0] sm:$0x1] %vm9_vm1, %v8_v16  }
  0x78   :  { %v14_v18 = vpop.permute.xlu0 %13   ;;  %v26_v19 = vpop.permute.xlu1 %25  }
  0x79   :  { %16 = vst.msk [vmem:[#allocation0] sm:$0x1] %vm15_vm2, %v14_v18  }
  0x7a   :  { %22 = vst.msk [vmem:[#allocation0] sm:$0x1] %vm21_vm3, %v20_v17  }
  0x7b   :  { %28 = vst.msk [vmem:[#allocation0] sm:$0x1] %vm27_vm4, %v26_v19  }
  0x7c   :  { %v32_v20 = vpop.permute.xlu0 %31   ;;  %v38_v21 = vpop.permute.xlu1 %37  }
  0x7d   :  { %34 = vst.msk [vmem:[#allocation0] sm:$0x1] %vm33_vm5, %v32_v20  }
  0x7e   :  { %40 = vst.msk [vmem:[#allocation0] sm:$0x1] %vm39_vm6, %v38_v21  }
  0x80   :  { %v44_v22 = vpop.permute.xlu0 %43   ;;  %v50_v23 = vpop.permute.xlu1 %49  }
  0x81   :  { %46 = vst.msk [vmem:[#allocation0] sm:$0x1] %vm45_vm7, %v44_v22  }
  0x82   :  { %52 = vst.msk [vmem:[#allocation0] sm:$0x1] %vm51_vm8, %v50_v23  }
  0x84   :  { %v56_v24 = vpop.permute.xlu0 %55   ;;  %v62_v25 = vpop.permute.xlu1 %61  }
  0x85   :  { %58 = vst.msk [vmem:[#allocation0] sm:$0x1] %vm57_vm9, %v56_v24  }
  0x86   :  { %64 = vst.msk [vmem:[#allocation0] sm:$0x1] %vm63_vm10, %v62_v25  }
  0x88   :  { %v68_v26 = vpop.permute.xlu0 %67   ;;  %v74_v27 = vpop.permute.xlu1 %73  }
  0x89   :  { %70 = vst.msk [vmem:[#allocation0] sm:$0x1] %vm69_vm11, %v68_v26  }
  0x8a   :  { %76 = vst.msk [vmem:[#allocation0] sm:$0x1] %vm75_vm12, %v74_v27  }
  0x8c   :  { %v80_v28 = vpop.permute.xlu0 %79   ;;  %v86_v29 = vpop.permute.xlu1 %85  }
  0x8d   :  { %82 = vst.msk [vmem:[#allocation0] sm:$0x1] %vm81_vm13, %v80_v28  }
  0x8e   :  { %88 = vst.msk [vmem:[#allocation0] sm:$0x1] %vm87_vm14, %v86_v29  }
  0x90   :  { %v92_v30 = vpop.permute.xlu0 %91  }
  0x91   :  { %94 = vst.msk [vmem:[#allocation0] sm:$0x1] %vm93_vm15, %v92_v30  }
  0x98   :  { %v99_v31 = vld [vmem:[#allocation0] sm:$0x1] }
  0x99   :  { %102 = vst [vmem:[%s210_s1] sm:$0x1] %v99_v31 }

// kernel: conv_block_forward.3
= control target key start
LH: loop header
LB: loop body
LE: loop exit
PB: predicated region body
PF: predicated region fallthrough
CT: control target
= control target key end

     0   :  { %s557_s12 = smov 0   ;;  %s727_s0 = inlined_call_operand.vmem [shape: f32[2,16,64], index: 0, kind: input, shape index: {}]   ;;  %s728_s1 = inlined_call_operand.vmem [shape: f32[216,128], index: 1, kind: input, shape index: {}]   ;;  %s729_s2 = inlined_call_operand.vmem [shape: f32[2,16,128], index: 2, kind: output, shape index: {0}]   ;;  %s730_s3 = inlined_call_operand.vmem [shape: f32[2,2,128], index: 3, kind: output, shape index: {1}]  }
   0x1 LB: > { %s443_s13 = sadd.s32 4294967295, %s531_s12   ;;  %p447_p0 = scmp.ge.s32.totalorder %s531_s12, 1  ;;  %s531_s12 = sphi %s557_s12, %s14_s12  }
   0x2   : > { %p140_p1 = scmp.lt.s32.totalorder %s531_s12, 3 }
   0x4   : > { %p141_p2 = pnand %p447_p0, %p140_p1 }
   0x5   : > { %p168_p3 = scmp.lt.s32.totalorder (!%p141_p2), %s443_s13, 1  ;;  %s534_s18 = smov (!%p141_p2), 4  }
   0x6   : > { %144 = sbr.rel (%p141_p2) target bundleno = 475 (0x1db), region = 28  ;;  %s535_s25 = smov (!%p141_p2), 72  }
   0x7   : > { %s536_s26 = smov (!%p141_p2), 16  }
   0xb   : > { %vm182_vm0 = vcmask 588800   ;;  %vm185_vm1 = vcmask 582656   ;;  %v533_v0 = vmov 0.0   ;;  %s732_s13 = smov (!%p168_p3, %s443_s13), 1  ;;  %v242_v3 = vld [vmem:[%s728_s1 + $0x78] sm:$0xff]  ;;  %v241_v4 = vld [vmem:[%s728_s1 + $0x70] sm:$0xff] }
   0xc   : > { %183 = vst.msk [vmem:[#allocation2] sm:$0xff] %vm182_vm0, %v533_v0  ;;  %184 = vst.msk [vmem:[#allocation2 + $0x8] sm:$0xff] %vm182_vm0, %v533_v0  ;;  %261 = vmatprep.subr.mxu0 %v533_v0  ;;  %459 = vmatprep.subr.mxu1 %v533_v0  ;;  %s457_s14 = sshll.u32 %s732_s13, 4  ;;  %v240_v5 = vld [vmem:[%s728_s1 + $0x68] sm:$0xff]  ;;  %v239_v6 = vld [vmem:[%s728_s1 + $0x60] sm:$0xff]  ;;  %vm197_vm2 = vcmask 556064  }
   0xd   : > { %186 = vst.msk [vmem:[#allocation2 + $0x10] sm:$0x3] %vm185_vm1, %v533_v0  ;;  %s172_s17 = scalar_lea.vmem %s727_s0, %s457_s14  ;;  %262 = vmatpush1.msra.mxu0 %v242_v3  ;;  %486 = vmatpush1.msra.mxu1 %v242_v3  ;;  %v238_v7 = vld [vmem:[%s728_s1 + $0x58] sm:$0xff]  ;;  %v237_v8 = vld [vmem:[%s728_s1 + $0x50] sm:$0xff]  ;;  %v236_v9 = vld [vmem:[%s728_s1 + $0x48] sm:$0xff]  ;;  %vm224_vm3 = vcmask 130048   ;;  %s177_s29 = scalar_lea.vmem %s729_s2, %s457_s14 }
   0xe   : > { %v187_v1 = vld [vmem:[%s172_s17] sm:$0xff]  ;;  %v188_v2 = vld [vmem:[%s172_s17 + $0x8] sm:$0xff]  ;;  %263 = vmatprep.subr.mxu0 %v533_v0  ;;  %460 = vmatprep.subr.mxu1 %v533_v0  ;;  %v234_v11 = vld [vmem:[%s728_s1 + $0x38] sm:$0xff]  ;;  %vm254_vm4 = vcmask 719872   ;;  %s452_s14 = sshll.u32 %s732_s13, 1  ;;  %vm352_vm5 = vcmask 1040384  }
   0xf   : > { %191 = vrot.lane.b32.xlu0 %v187_v1, %s534_s18  ;;  %264 = vmatpush1.msra.mxu0 %v241_v4  ;;  %v235_v10 = vld [vmem:[%s728_s1 + $0x40] sm:$0xff]  ;;  %v233_v12 = vld [vmem:[%s728_s1 + $0x30] sm:$0xff]  ;;  %v232_v13 = vld [vmem:[%s728_s1 + $0x28] sm:$0xff]  ;;  %s181_s5 = scalar_lea.vmem %s730_s3, %s452_s14 }
  0x10   : > { %265 = vmatprep.subr.mxu0 %v533_v0  ;;  %487 = vmatpush1.msra.mxu1 %v241_v4  ;;  %v231_v14 = vld [vmem:[%s728_s1 + $0x20] sm:$0xff]  ;;  %v230_v15 = vld [vmem:[%s728_s1 + $0x18] sm:$0xff]  ;;  %v229_v16 = vld [vmem:[%s728_s1 + $0x10] sm:$0xff] }
  0x11   : > { %266 = vmatpush1.msra.mxu0 %v240_v5  ;;  %461 = vmatprep.subr.mxu1 %v533_v0  ;;  %v228_v17 = vld [vmem:[%s728_s1 + $0x8] sm:$0xff]  ;;  %v227_v18 = vld [vmem:[%s728_s1] sm:$0xff]  ;;  %v253_v19 = vld [vmem:[%s728_s1 + $0xd0] sm:$0xff] }
  0x12   : > { %267 = vmatprep.subr.mxu0 %v533_v0  ;;  %488 = vmatpush1.msra.mxu1 %v240_v5  ;;  %v252_v20 = vld [vmem:[%s728_s1 + $0xc8] sm:$0xff]  ;;  %v251_v21 = vld [vmem:[%s728_s1 + $0xc0] sm:$0xff]  ;;  %v250_v22 = vld [vmem:[%s728_s1 + $0xb8] sm:$0xff] }
  0x13   : > { %193 = vrot.lane.b32.xlu0 %v188_v2, %s534_s18  ;;  %268 = vmatpush1.msra.mxu0 %v239_v6  ;;  %v249_v23 = vld [vmem:[%s728_s1 + $0xb0] sm:$0xff]  ;;  %v248_v24 = vld [vmem:[%s728_s1 + $0xa8] sm:$0xff]  ;;  %v247_v25 = vld [vmem:[%s728_s1 + $0xa0] sm:$0xff] }
  0x14   : > { %462 = vmatprep.subr.mxu1 %v533_v0  ;;  %269 = vmatprep.subr.mxu0 %v533_v0  ;;  %v246_v26 = vld [vmem:[%s728_s1 + $0x98] sm:$0xff]  ;;  %v245_v27 = vld [vmem:[%s728_s1 + $0x90] sm:$0xff]  ;;  %v244_v28 = vld [vmem:[%s728_s1 + $0x88] sm:$0xff] }
  0x15   : > { %489 = vmatpush1.msra.mxu1 %v239_v6  ;;  %270 = vmatpush1.msra.mxu0 %v238_v7  ;;  %v243_v29 = vld [vmem:[%s728_s1 + $0x80] sm:$0xff] }
  0x16   : > { %463 = vmatprep.subr.mxu1 %v533_v0  ;;  %271 = vmatprep.subr.mxu0 %v533_v0 }
  0x17   : > { %490 = vmatpush1.msra.mxu1 %v238_v7  ;;  %272 = vmatpush1.msra.mxu0 %v237_v8 }
  0x18   : > { %464 = vmatprep.subr.mxu1 %v533_v0  ;;  %273 = vmatprep.subr.mxu0 %v533_v0 }
  0x19   : > { %491 = vmatpush1.msra.mxu1 %v237_v8  ;;  %274 = vmatpush1.msra.mxu0 %v236_v9 }
  0x1a   : > { %465 = vmatprep.subr.mxu1 %v533_v0  ;;  %275 = vmatprep.subr.mxu0 %v533_v0 }
  0x1b   : > { %492 = vmatpush1.msra.mxu1 %v236_v9  ;;  %276 = vmatpush1.msra.mxu0 %v235_v10 }
  0x1c   : > { %466 = vmatprep.subr.mxu1 %v533_v0  ;;  %277 = vmatprep.subr.mxu0 %v533_v0 }
  0x1d   : > { %493 = vmatpush1.msra.mxu1 %v235_v10  ;;  %278 = vmatpush1.msra.mxu0 %v234_v11 }
  0x1e   : > { %467 = vmatprep.subr.mxu1 %v533_v0  ;;  %279 = vmatprep.subr.mxu0 %v533_v0 }
  0x1f   : > { %494 = vmatpush1.msra.mxu1 %v234_v11  ;;  %280 = vmatpush1.msra.mxu0 %v233_v12 }
  0x20   : > { %468 = vmatprep.subr.mxu1 %v533_v0  ;;  %281 = vmatprep.subr.mxu0 %v533_v0 }
  0x21   : > { %495 = vmatpush1.msra.mxu1 %v233_v12  ;;  %282 = vmatpush1.msra.mxu0 %v232_v13 }
  0x22   : > { %469 = vmatprep.subr.mxu1 %v533_v0  ;;  %283 = vmatprep.subr.mxu0 %v533_v0 }
  0x23   : > { %496 = vmatpush1.msra.mxu1 %v232_v13  ;;  %284 = vmatpush1.msra.mxu0 %v231_v14 }
  0x24   : > { %470 = vmatprep.subr.mxu1 %v533_v0  ;;  %285 = vmatprep.subr.mxu0 %v533_v0 }
  0x25   : > { %497 = vmatpush1.msra.mxu1 %v231_v14  ;;  %286 = vmatpush1.msra.mxu0 %v230_v15 }
  0x26   : > { %471 = vmatprep.subr.mxu1 %v533_v0  ;;  %287 = vmatprep.subr.mxu0 %v533_v0 }
  0x27   : > { %498 = vmatpush1.msra.mxu1 %v230_v15  ;;  %288 = vmatpush1.msra.mxu0 %v229_v16 }
  0x28   : > { %472 = vmatprep.subr.mxu1 %v533_v0  ;;  %289 = vmatprep.subr.mxu0 %v533_v0 }
  0x29   : > { %499 = vmatpush1.msra.mxu1 %v229_v16  ;;  %290 = vmatpush1.msra.mxu0 %v228_v17 }
  0x2a   : > { %473 = vmatprep.subr.mxu1 %v533_v0  ;;  %291 = vmatprep.subr.mxu0 %v533_v0 }
  0x2b   : > { %500 = vmatpush1.msra.mxu1 %v228_v17  ;;  %292 = vmatpush1.msra.mxu0 %v227_v18 }
  0x2c   : > { %474 = vmatprep.subr.mxu1 %v533_v0  ;;  %303 = vmatprep.subr.mxu0 %v533_v0 }
  0x2d   : > { %501 = vmatpush1.msra.mxu1 %v227_v18  ;;  %304 = vmatpush2.msra.mxu0 %v253_v19 }
  0x2e   : > { %475 = vmatprep.subr.mxu1 %v533_v0  ;;  %305 = vmatprep.subr.mxu0 %v533_v0 }
  0x2f   : > { %502 = vmatpush2.msra.mxu1 %v253_v19  ;;  %306 = vmatpush2.msra.mxu0 %v252_v20 }
  0x30   : > { %476 = vmatprep.subr.mxu1 %v533_v0  ;;  %307 = vmatprep.subr.mxu0 %v533_v0 }
  0x31   : > { %503 = vmatpush2.msra.mxu1 %v252_v20  ;;  %308 = vmatpush2.msra.mxu0 %v251_v21 }
  0x32   : > { %477 = vmatprep.subr.mxu1 %v533_v0  ;;  %309 = vmatprep.subr.mxu0 %v533_v0 }
  0x33   : > { %504 = vmatpush2.msra.mxu1 %v251_v21  ;;  %310 = vmatpush2.msra.mxu0 %v250_v22 }
  0x34   : > { %478 = vmatprep.subr.mxu1 %v533_v0  ;;  %311 = vmatprep.subr.mxu0 %v533_v0 }
  0x35   : > { %505 = vmatpush2.msra.mxu1 %v250_v22  ;;  %312 = vmatpush2.msra.mxu0 %v249_v23 }
  0x36   : > { %479 = vmatprep.subr.mxu1 %v533_v0  ;;  %313 = vmatprep.subr.mxu0 %v533_v0 }
  0x37   : > { %506 = vmatpush2.msra.mxu1 %v249_v23  ;;  %314 = vmatpush2.msra.mxu0 %v248_v24 }
  0x38   : > { %480 = vmatprep.subr.mxu1 %v533_v0  ;;  %315 = vmatprep.subr.mxu0 %v533_v0 }
  0x39   : > { %507 = vmatpush2.msra.mxu1 %v248_v24  ;;  %316 = vmatpush2.msra.mxu0 %v247_v25 }
  0x3a   : > { %481 = vmatprep.subr.mxu1 %v533_v0  ;;  %317 = vmatprep.subr.mxu0 %v533_v0 }
  0x3b   : > { %508 = vmatpush2.msra.mxu1 %v247_v25  ;;  %318 = vmatpush2.msra.mxu0 %v246_v26 }
  0x3c   : > { %482 = vmatprep.subr.mxu1 %v533_v0  ;;  %319 = vmatprep.subr.mxu0 %v533_v0 }
  0x3d   : > { %509 = vmatpush2.msra.mxu1 %v246_v26  ;;  %320 = vmatpush2.msra.mxu0 %v245_v27 }
  0x3e   : > { %483 = vmatprep.subr.mxu1 %v533_v0  ;;  %321 = vmatprep.subr.mxu0 %v533_v0 }
  0x3f   : > { %510 = vmatpush2.msra.mxu1 %v245_v27  ;;  %322 = vmatpush2.msra.mxu0 %v244_v28 }
  0x40   : > { %484 = vmatprep.subr.mxu1 %v533_v0  ;;  %323 = vmatprep.subr.mxu0 %v533_v0 }
  0x41   : > { %511 = vmatpush2.msra.mxu1 %v244_v28  ;;  %324 = vmatpush2.msra.mxu0 %v243_v29 }
  0x42   : > { %485 = vmatprep.subr.mxu1 %v533_v0 }
  0x43   : > { %512 = vmatpush2.msra.mxu1 %v243_v29 }
  0x81   : > { %v192_v30 = vpop.permute.xlu0 %191 }
  0x82   : > { %198 = vst.msk [vmem:[#allocation2 + $0x1] sm:$0xff] %vm197_vm2, %v192_v30 }
  0x85   : > { %v194_v31 = vpop.permute.xlu0 %193 }
  0x86   : > { %199 = vst.msk [vmem:[#allocation2 + $0x9] sm:$0xff] %vm197_vm2, %v194_v31 }
  0x89   : > { %v202_v32 = vld [vmem:[#allocation2 + $0x1] sm:$0xff] }
  0x8a   : > { %208 = vrot.lane.b32.xlu1 %v202_v32, %s535_s25  ;;  %v200_v40 = vld [vmem:[#allocation2] sm:$0xff] }
  0x8d   : > { %v204_v33 = vld [vmem:[#allocation2 + $0x2] sm:$0xff]  ;;  %v205_v35 = vld [vmem:[#allocation2 + $0xa] sm:$0xff] }
  0x8e   : > { %v203_v34 = vld [vmem:[#allocation2 + $0x9] sm:$0xff]  ;;  %216 = vrot.lane.b32.xlu0 %v204_v33, %s536_s26 }
  0x8f   : > { %210 = vrot.lane.b32.xlu1 %v203_v34, %s535_s25  ;;  %v201_v44 = vld [vmem:[#allocation2 + $0x8] sm:$0xff] }
  0x93   : > { %218 = vrot.lane.b32.xlu1 %v205_v35, %s536_s26 }
  0xfc   : > { %v209_v36 = vpop.permute.xlu1 %208 }
  0xfd   : > { %v222_v41 = vsel %vm182_vm0, %v200_v40, %v209_v36 }
 0x100   : > { %v217_v37 = vpop.permute.xlu0 %216 }
 0x101   : > { %v211_v38 = vpop.permute.xlu1 %210  ;;  %v225_v39 = vsel %vm224_vm3, %v209_v36, %v217_v37 }
 0x102   : > { %453 = vmatprep.mubr.msk.f32.mxu0 %vm254_vm4, %v225_v39  ;;  %v223_v45 = vsel %vm182_vm0, %v201_v44, %v211_v38 }
 0x103   : > { %326 = vmatmul.mubr.f32.vlgmr.msra.gmra.mxu0 %v222_v41 }
 0x105   : > { %v219_v42 = vpop.permute.xlu1 %218 }
 0x106   : > { %v226_v43 = vsel %vm224_vm3, %v211_v38, %v219_v42 }
 0x107   : > { %454 = vmatprep.mubr.msk.f32.mxu1 %vm254_vm4, %v226_v43 }
 0x108   : > { %331 = vmatmul.mubr.f32.vlgmr.msra.gmra.mxu1 %v223_v45 }
 0x1c3   : > { %v327_v46 = vpop.f32.mrf.mxu0 }
 0x1c4   : > { %355 = vst [vmem:[%s177_s29] sm:$0xff] %v327_v46  ;;  %v343_v49 = vmul.f32 %v327_v46, %v327_v46 }
 0x1c5   : > { %v329_v47 = vpop.f32.mrf.mxu0 }
 0x1c8   : > { %v332_v48 = vpop.f32.mrf.mxu1 }
 0x1c9   : > { %v336_v50 = vadd.f32 %v332_v48, %v327_v46  ;;  %v344_v51 = vmul.f32 %v332_v48, %v332_v48  ;;  %356 = vst [vmem:[%s177_s29 + $0x8] sm:$0xff] %v332_v48 }
 0x1ca   : > { %v334_v52 = vpop.f32.mrf.mxu1 }
 0x1cb   : > { %v337_v53 = vrot.slane %v336_v50, 4  ;;  %v345_v54 = vadd.f32 %v344_v51, %v343_v49 }
 0x1cd   : > { %v338_v55 = vadd.f32 %v337_v53, %v336_v50  ;;  %v346_v56 = vrot.slane %v345_v54, 4 }
 0x1cf   : > { %v339_v57 = vrot.slane %v338_v55, 2  ;;  %v347_v58 = vadd.f32 %v346_v56, %v345_v54 }
 0x1d1   : > { %v340_v59 = vadd.f32 %v339_v57, %v338_v55  ;;  %v348_v60 = vrot.slane %v347_v58, 2 }
 0x1d3   : > { %v341_v61 = vrot.slane %v340_v59, 1  ;;  %v349_v62 = vadd.f32 %v348_v60, %v347_v58 }
 0x1d5   : > { %v350_v63 = vrot.slane %v349_v62, 1  ;;  %v342_v0 = vadd.f32 %v341_v61, %v340_v59 }
 0x1d7   : > { %v351_v1 = vadd.f32 %v350_v63, %v349_v62 }
 0x1d9   : > { %v353_v2 = vsel %vm352_vm5, %v342_v0, %v351_v1 }
 0x1da   : > { %354 = vst [vmem:[%s181_s5] sm:$0x3] %v353_v2 }
 0x1db PF: > { %s14_s12 = sadd.s32 1, %s531_s12  }
 0x1dc   : > { %p11_p4 = scmp.ge.s32.totalorder %s14_s12, 4  }
 0x1de   :  { %13 = sbr.rel (!%p11_p4) target bundleno = 1 (0x1), region = 70 }

// kernel: conv_block_forward.5
= control target key start
LH: loop header
LB: loop body
LE: loop exit
PB: predicated region body
PF: predicated region fallthrough
CT: control target
= control target key end

     0   :  { %s303_s12 = smov 0   ;;  %s320_s0 = inlined_call_operand.vmem [shape: f32[32,128], index: 0, kind: input, shape index: {}]   ;;  %s321_s1 = inlined_call_operand.vmem [shape: f32[1,128], index: 1, kind: input, shape index: {}]   ;;  %s322_s2 = inlined_call_operand.vmem [shape: f32[1,128], index: 2, kind: input, shape index: {}]   ;;  %s323_s3 = inlined_call_operand.vmem [shape: f32[32,128], index: 3, kind: output, shape index: {}]  }
   0x1 LB: > { %s254_s13 = sadd.s32 4294967295, %s281_s12   ;;  %p258_p0 = scmp.ge.s32.totalorder %s281_s12, 1  ;;  %s281_s12 = sphi %s303_s12, %s13_s12  }
   0x2   : > { %p138_p1 = scmp.lt.s32.totalorder %s281_s12, 3 }
   0x4   : > { %p139_p2 = pnand %p258_p0, %p138_p1 }
   0x5   : > { %s259_s14 = sshll.u32 (!%p139_p2), %s254_s13, 1 }
   0x6   : > { %142 = sbr.rel (%p139_p2) target bundleno = 22 (0x16), region = 32  ;;  %p163_p3 = scmp.lt.s32.totalorder (!%p139_p2), %s259_s14, 3 }
   0xb   : > { %s325_s14 = smov (!%p163_p3, %s259_s14), 3  ;;  %v263_v0 = vld [vmem:[%s321_s1] ss:$0 sm:$0xff] }
   0xc   : > { %s260_s15 = sshll.u32 %s325_s14, 3  ;;  %v264_v3 = vld [vmem:[%s322_s2] ss:$0 sm:$0xff] }
   0xd   : > { %s166_s20 = scalar_lea.vmem %s320_s0, %s260_s15  ;;  %s172_s25 = scalar_lea.vmem %s323_s3, %s260_s15 }
   0xe   : > { %v174_v1 = vld [vmem:[%s166_s20] sm:$0xff]  ;;  %v175_v2 = vld [vmem:[%s166_s20 + $0x8] sm:$0xff] }
   0xf   : > { %v183_v4 = vmul.f32 %v263_v0, %v174_v1  ;;  %v184_v5 = vmul.f32 %v263_v0, %v175_v2 }
  0x11   : > { %v192_v6 = vadd.f32 %v264_v3, %v183_v4  ;;  %v193_v7 = vadd.f32 %v264_v3, %v184_v5 }
  0x13   : > { %v194_v8 = vmax.f32 %v192_v6, 0.0  ;;  %v195_v9 = vmax.f32 %v193_v7, 0.0 }
  0x15   : > { %196 = vst [vmem:[%s172_s25] sm:$0xff] %v194_v8  ;;  %197 = vst [vmem:[%s172_s25 + $0x8] sm:$0xff] %v195_v9 }
  0x16 PF: > { %s13_s12 = sadd.s32 1, %s281_s12  }
  0x17   : > { %p10_p4 = scmp.ge.s32.totalorder %s13_s12, 4  }
  0x19   :  { %12 = sbr.rel (!%p10_p4) target bundleno = 1 (0x1), region = 62 }

// kernel: conv_block_forward.4
= control target key start
LH: loop header
LB: loop body
LE: loop exit
PB: predicated region body
PF: predicated region fallthrough
CT: control target
= control target key end

     0   :  { %s573_s18 = smov 0   ;;  %s659_s0 = inlined_call_operand.vmem [shape: f32[32,128], index: 0, kind: input, shape index: {}]   ;;  %s660_s1 = inlined_call_operand.vmem [shape: f32[1,128], index: 1, kind: input, shape index: {}]   ;;  %s661_s2 = inlined_call_operand.vmem [shape: f32[1,128], index: 2, kind: input, shape index: {}]   ;;  %s662_s3 = inlined_call_operand.vmem [shape: f32[128,128], index: 3, kind: input, shape index: {}]   ;;  %s663_s4 = inlined_call_operand.vmem [shape: f32[32,128], index: 4, kind: output, shape index: {0}]   ;;  %s664_s5 = inlined_call_operand.vmem [shape: f32[2,2,128], index: 5, kind: output, shape index: {1}]  }
   0x1 LB: > { %s579_s19 = sadd.s32 4294967295, %s541_s18   ;;  %p464_p0 = scmp.ge.s32.totalorder %s541_s18, 1  ;;  %s541_s18 = sphi %s573_s18, %s16_s18  }
   0x2   : > { %p191_p1 = scmp.lt.s32.totalorder %s541_s18, 3 }
   0x4   : > { %p192_p2 = pnand %p464_p0, %p191_p1 }
   0x5   : > { %s465_s24 = sshll.u32 (!%p192_p2), %s579_s19, 1  ;;  %p235_p4 = scmp.lt.s32.totalorder (!%p192_p2), %s579_s19, 1 }
   0x6   : > { %195 = sbr.rel (%p192_p2) target bundleno = 257 (0x101), region = 36  ;;  %p224_p3 = scmp.lt.s32.totalorder (!%p192_p2), %s465_s24, 3 }
   0xb   : > { %v276_v0 = vld [vmem:[%s662_s3 + $0x78] sm:$0xff]  ;;  %v275_v1 = vld [vmem:[%s662_s3 + $0x70] sm:$0xff]  ;;  %v274_v2 = vld [vmem:[%s662_s3 + $0x68] sm:$0xff]  ;;  %s666_s24 = smov (!%p224_p3, %s465_s24), 3  ;;  %s668_s19 = smov (!%p235_p4, %s579_s19), 1  ;;  %vm368_vm0 = vcmask 1040384  }
   0xc   : > { %492 = vmatprep.subr.mxu0 %v276_v0  ;;  %v273_v3 = vld [vmem:[%s662_s3 + $0x60] sm:$0xff]  ;;  %s466_s29 = sshll.u32 %s666_s24, 3  ;;  %v272_v5 = vld [vmem:[%s662_s3 + $0x58] sm:$0xff]  ;;  %v271_v8 = vld [vmem:[%s662_s3 + $0x50] sm:$0xff]  ;;  %s469_s24 = sshll.u32 %s668_s19, 1 }
   0xd   : > { %493 = vmatpush3.msra.mxu0 %v276_v0  ;;  %v470_v4 = vld [vmem:[%s660_s1] ss:$0 sm:$0xff]  ;;  %s227_s11 = scalar_lea.vmem %s659_s0, %s466_s29  ;;  %v270_v10 = vld [vmem:[%s662_s3 + $0x48] sm:$0xff]  ;;  %v268_v14 = vld [vmem:[%s662_s3 + $0x38] sm:$0xff]  ;;  %s233_s17 = scalar_lea.vmem %s663_s4, %s466_s29 }
   0xe   : > { %494 = vmatprep.subr.mxu0 %v275_v1  ;;  %v239_v6 = vld [vmem:[%s227_s11] sm:$0xff]  ;;  %v267_v15 = vld [vmem:[%s662_s3 + $0x30] sm:$0xff]  ;;  %v266_v16 = vld [vmem:[%s662_s3 + $0x28] sm:$0xff]  ;;  %s238_s21 = scalar_lea.vmem %s664_s5, %s469_s24 }
   0xf   : > { %495 = vmatpush3.msra.mxu0 %v275_v1  ;;  %v471_v7 = vld [vmem:[%s661_s2] ss:$0 sm:$0xff]  ;;  %v248_v9 = vmul.f32 %v470_v4, %v239_v6  ;;  %v240_v17 = vld [vmem:[%s227_s11 + $0x8] sm:$0xff]  ;;  %v264_v20 = vld [vmem:[%s662_s3 + $0x18] sm:$0xff] }
  0x10   : > { %496 = vmatprep.subr.mxu0 %v274_v2  ;;  %v269_v12 = vld [vmem:[%s662_s3 + $0x40] sm:$0xff]  ;;  %v249_v19 = vmul.f32 %v470_v4, %v240_v17  ;;  %v263_v21 = vld [vmem:[%s662_s3 + $0x10] sm:$0xff]  ;;  %v262_v23 = vld [vmem:[%s662_s3 + $0x8] sm:$0xff] }
  0x11   : > { %497 = vmatpush3.msra.mxu0 %v274_v2  ;;  %v257_v11 = vadd.f32 %v471_v7, %v248_v9  ;;  %v265_v18 = vld [vmem:[%s662_s3 + $0x20] sm:$0xff] }
  0x12   : > { %498 = vmatprep.subr.mxu0 %v273_v3  ;;  %v258_v22 = vadd.f32 %v471_v7, %v249_v19  ;;  %v261_v24 = vld [vmem:[%s662_s3] sm:$0xff] }
  0x13   : > { %499 = vmatpush3.msra.mxu0 %v273_v3  ;;  %v259_v13 = vmax.f32 %v257_v11, 0.0 }
  0x14   : > { %500 = vmatprep.subr.mxu0 %v272_v5  ;;  %v260_v25 = vmax.f32 %v258_v22, 0.0 }
  0x15   : > { %501 = vmatpush3.msra.mxu0 %v272_v5  ;;  %524 = vmatprep.mubr.f32.mxu0 %v259_v13 }
  0x16   : > { %502 = vmatprep.subr.mxu0 %v271_v8 }
  0x17   : > { %503 = vmatpush3.msra.mxu0 %v271_v8 }
  0x18   : > { %504 = vmatprep.subr.mxu0 %v270_v10 }
  0x19   : > { %505 = vmatpush3.msra.mxu0 %v270_v10 }
  0x1a   : > { %506 = vmatprep.subr.mxu0 %v269_v12 }
  0x1b   : > { %507 = vmatpush3.msra.mxu0 %v269_v12 }
  0x1c   : > { %508 = vmatprep.subr.mxu0 %v268_v14 }
  0x1d   : > { %509 = vmatpush3.msra.mxu0 %v268_v14 }
  0x1e   : > { %510 = vmatprep.subr.mxu0 %v267_v15 }
  0x1f   : > { %511 = vmatpush3.msra.mxu0 %v267_v15 }
  0x20   : > { %512 = vmatprep.subr.mxu0 %v266_v16 }
  0x21   : > { %513 = vmatpush3.msra.mxu0 %v266_v16 }
  0x22   : > { %514 = vmatprep.subr.mxu0 %v265_v18 }
  0x23   : > { %515 = vmatpush3.msra.mxu0 %v265_v18 }
  0x24   : > { %516 = vmatprep.subr.mxu0 %v264_v20 }
  0x25   : > { %517 = vmatpush3.msra.mxu0 %v264_v20 }
  0x26   : > { %518 = vmatprep.subr.mxu0 %v263_v21 }
  0x27   : > { %519 = vmatpush3.msra.mxu0 %v263_v21 }
  0x28   : > { %520 = vmatprep.subr.mxu0 %v262_v23 }
  0x29   : > { %521 = vmatpush3.msra.mxu0 %v262_v23 }
  0x2a   : > { %522 = vmatprep.subr.mxu0 %v261_v24 }
  0x2b   : > { %523 = vmatpush3.msra.mxu0 %v261_v24 }
  0x2c   : > { %525 = vmatmul.mubr.f32.vlgmr.msra.gmra.mxu0 %v260_v25 }
  0xec   : > { %v526_v26 = vpop.f32.mrf.mxu0 }
  0xed   : > { %v360_v28 = vmul.f32 %v526_v26, %v526_v26  ;;  %372 = vst [vmem:[%s233_s17 + $0x8] sm:$0xff] %v526_v26 }
  0xee   : > { %v343_v27 = vpop.f32.mrf.mxu0 }
  0xef   : > { %v352_v29 = vadd.f32 %v526_v26, %v343_v27  ;;  %v359_v30 = vmul.f32 %v343_v27, %v343_v27  ;;  %371 = vst [vmem:[%s233_s17] sm:$0xff] %v343_v27 }
  0xf1   : > { %v353_v31 = vrot.slane %v352_v29, 4  ;;  %v361_v32 = vadd.f32 %v360_v28, %v359_v30 }
  0xf3   : > { %v354_v33 = vadd.f32 %v353_v31, %v352_v29  ;;  %v362_v34 = vrot.slane %v361_v32, 4 }
  0xf5   : > { %v355_v35 = vrot.slane %v354_v33, 2  ;;  %v363_v36 = vadd.f32 %v362_v34, %v361_v32 }
  0xf7   : > { %v356_v37 = vadd.f32 %v355_v35, %v354_v33  ;;  %v364_v38 = vrot.slane %v363_v36, 2 }
  0xf9   : > { %v357_v39 = vrot.slane %v356_v37, 1  ;;  %v365_v40 = vadd.f32 %v364_v38, %v363_v36 }
  0xfb   : > { %v366_v41 = vrot.slane %v365_v40, 1  ;;  %v358_v42 = vadd.f32 %v357_v39, %v356_v37 }
  0xfd   : > { %v367_v43 = vadd.f32 %v366_v41, %v365_v40 }
  0xff   : > { %v369_v44 = vsel %vm368_vm0, %v358_v42, %v367_v43 }
 0x100   : > { %370 = vst [vmem:[%s238_s21] sm:$0x3] %v369_v44 }
 0x101 PF: > { %s16_s18 = sadd.s32 1, %s541_s18  }
 0x102   : > { %p13_p5 = scmp.ge.s32.totalorder %s16_s18, 4  }
 0x104   :  { %15 = sbr.rel (!%p13_p5) target bundleno = 1 (0x1), region = 78 }

</bundles_post_ra>
